<compile_context>
chip_gen: v7x
topology: tpu7x:2x2x1
jax: 0.10.0
libtpu: 0.0.40
codegen_flags: <defaults>
</compile_context>

<pallas_src>
import functools

import jax
import jax.numpy as jnp
from jax.experimental import pallas as pl
from jax.experimental.pallas import tpu as pltpu

LANE = 128
MiB = 1024 * 1024


def _round_up(x, m):
    return ((x + m - 1) // m) * m


def _fused_gnn_kernel(a_ref, x_ref, wl1_ref, wr1_ref, b1_ref,
                      wl2_ref, wr2_ref, b2_ref, o_ref,
                      y1_ref, root1_ref, y2_ref, root2_ref,
                      *, tm, a_resident):
    phase = pl.program_id(0)
    r = pl.program_id(1)
    row0 = pl.multiple_of(r * tm, tm)

    # --- One-time setup: layer-1 reassociation (runs on the first grid step).
    # Note: padded rows of X are zero, so y1/root1 padded rows are 0 / b1.  The
    # padded rows of h therefore evaluate to relu(b1) != 0, which is benign
    # because the padded COLUMNS of A are zero and padded output rows are
    # sliced away — do not read h/y2 rows beyond the real node count directly.
    @pl.when(jnp.logical_and(phase == 0, r == 0))
    def _setup():
        xb = x_ref[...]
        y1_ref[...] = jnp.dot(
            xb, wl1_ref[...], preferred_element_type=jnp.float32
        ).astype(y1_ref.dtype)
        root1_ref[...] = (
            jnp.dot(xb, wr1_ref[...], preferred_element_type=jnp.float32)
            + b1_ref[...]
        ).astype(root1_ref.dtype)

    # Row band of the mean-aggregation matrix for this grid step.
    if a_resident:
        a_band = a_ref[pl.ds(row0, tm), :]
    else:
        a_band = a_ref[...]

    @pl.when(phase == 0)
    def _layer1():
        # h = relu(A_band @ y1 + root1[rows])  -- contraction width = hidden.
        agg = jnp.dot(a_band, y1_ref[...], preferred_element_type=jnp.float32)
        h = jnp.maximum(agg + root1_ref[pl.ds(row0, tm), :].astype(jnp.float32), 0.0)

        # Layer-2 reassociation: precompute h @ W_l2 and the root term now so
        # the phase-1 N^2 matmul runs at width F_out and never touches weights.
        hb = h.astype(wl2_ref.dtype)
        y2_ref[pl.ds(row0, tm), :] = jnp.dot(
            hb, wl2_ref[...], preferred_element_type=jnp.float32
        ).astype(y2_ref.dtype)
        root2_ref[pl.ds(row0, tm), :] = (
            jnp.dot(hb, wr2_ref[...], preferred_element_type=jnp.float32)
            + b2_ref[...]
        ).astype(root2_ref.dtype)
        # NOTE: no o_ref write here (output index map collapses during phase 0).

    @pl.when(phase == 1)
    def _layer2():
        out = jnp.dot(a_band, y2_ref[...], preferred_element_type=jnp.float32)
        o_ref[...] = (
            out + root2_ref[pl.ds(row0, tm), :].astype(jnp.float32)
        ).astype(o_ref.dtype)


def prepare_gnn_inputs(x, adj_mean, params, *, row_tile=256,
                       mm_dtype=jnp.bfloat16, vmem_budget_bytes=40 * MiB):
    """Pad + cast all operands ONCE (hoisted out of the per-inference hot path).

    Returns (arrays, meta): arrays are the padded device buffers, meta the
    static kwargs for `gnn_forward_padded`.
    """
    n, f_in = x.shape
    hidden = params["w_l1"].shape[1]
    f_out = params["w_l2"].shape[1]

    # Row tiling: pad N to a multiple of 8, clamp the tile, pad N to the tile.
    n_p = _round_up(n, 8)
    tm = min(row_tile, n_p)
    n_p = _round_up(n_p, tm)

    # Lane-dense feature padding (multiples of 128).
    fpi = _round_up(f_in, LANE)
    hp = _round_up(hidden, LANE)
    fpo = _round_up(f_out, LANE)

    def pad2(a, s0, s1, dt):
        return jnp.zeros((s0, s1), dt).at[: a.shape[0], : a.shape[1]].set(a.astype(dt))

    a_p = pad2(adj_mean, n_p, n_p, mm_dtype)
    x_p = pad2(x, n_p, fpi, mm_dtype)
    wl1 = pad2(params["w_l1"], fpi, hp, mm_dtype)
    wr1 = pad2(params["w_r1"], fpi, hp, mm_dtype)
    wl2 = pad2(params["w_l2"], hp, fpo, mm_dtype)
    wr2 = pad2(params["w_r2"], hp, fpo, mm_dtype)
    b1 = jnp.zeros((1, hp), jnp.float32).at[0, :hidden].set(
        params["b1"].astype(jnp.float32))
    b2 = jnp.zeros((1, fpo), jnp.float32).at[0, :f_out].set(
        params["b2"].astype(jnp.float32))

    # VMEM budgeting (conservative: assume 2 pipeline buffers per input block).
    esz = jnp.dtype(mm_dtype).itemsize
    fixed = 2 * (n_p * fpi + 2 * fpi * hp + 2 * hp * fpo) * esz + 2 * (hp + fpo) * 4
    scratch = (2 * n_p * hp + 2 * n_p * fpo) * esz          # y1, root1, y2, root2
    out_buf = 2 * tm * fpo * 4
    a_res_bytes = 2 * n_p * n_p * esz
    a_stream_bytes = 2 * tm * n_p * esz

    a_resident = (fixed + scratch + out_buf + a_res_bytes) <= vmem_budget_bytes
    total = fixed + scratch + out_buf + (a_res_bytes if a_resident else a_stream_bytes)
    vmem_limit = int(min(96 * MiB, max(32 * MiB, total + total // 4 + 4 * MiB)))

    arrays = (a_p, x_p, wl1, wr1, b1, wl2, wr2, b2)
    meta = dict(n=n, f_out=f_out, tm=tm, a_resident=bool(a_resident),
                vmem_limit=vmem_limit)
    return arrays, meta


@functools.partial(jax.jit,
                   static_argnames=("n", "f_out", "tm", "a_resident", "vmem_limit"))
def gnn_forward_padded(a_p, x_p, wl1, wr1, b1, wl2, wr2, b2, *,
                       n, f_out, tm, a_resident, vmem_limit):
    """Fused 2-layer SAGEConv forward on pre-padded operands. Returns f32 [n, f_out]."""
    n_p = a_p.shape[0]
    fpi = x_p.shape[1]
    hp = wl1.shape[1]
    fpo = wl2.shape[1]
    r_tiles = n_p // tm
    mm_dtype = a_p.dtype

    def resident(shape):
        # Same block every grid step -> stays in VMEM, DMA'd once.
        return pl.BlockSpec(shape, lambda p, r: (0, 0))

    a_spec = (resident((n_p, n_p)) if a_resident
              else pl.BlockSpec((tm, n_p), lambda p, r: (r, 0)))

    kernel = functools.partial(_fused_gnn_kernel, tm=tm, a_resident=a_resident)

    out_p = pl.pallas_call(
        kernel,
        out_shape=jax.ShapeDtypeStruct((n_p, fpo), jnp.float32),
        grid_spec=pltpu.PrefetchScalarGridSpec(
            num_scalar_prefetch=0,
            grid=(2, r_tiles),                       # (phase, row tile)
            in_specs=[
                a_spec,                              # A (resident or streamed bands)
                resident((n_p, fpi)),                # X (resident; used only in setup)
                resident((fpi, hp)),                 # W_l1
                resident((fpi, hp)),                 # W_r1
                resident((1, hp)),                   # b1
                resident((hp, fpo)),                 # W_l2
                resident((hp, fpo)),                 # W_r2
                resident((1, fpo)),                  # b2
            ],
            # Phase 0 writes nothing; its output index collapses to block 0 so
            # the pipeline never flushes dead data to HBM before phase 1.
            out_specs=pl.BlockSpec((tm, fpo), lambda p, r: (p * r, 0)),
            scratch_shapes=[
                pltpu.VMEM((n_p, hp), mm_dtype),     # y1    = X @ W_l1
                pltpu.VMEM((n_p, hp), mm_dtype),     # root1 = X @ W_r1 + b1
                pltpu.VMEM((n_p, fpo), mm_dtype),    # y2    = h @ W_l2
                pltpu.VMEM((n_p, fpo), mm_dtype),    # root2 = h @ W_r2 + b2
            ],
        ),
        compiler_params=pltpu.CompilerParams(
            # INVARIANT: must remain ("arbitrary", "arbitrary") — phase 1 reads
            # scratch written by ALL phase-0 row tiles, and all phase-0 tiles
            # read scratch written by the (phase 0, r == 0) setup step.
            dimension_semantics=("arbitrary", "arbitrary"),
            vmem_limit_bytes=vmem_limit,
        ),
    )(a_p, x_p, wl1, wr1, b1, wl2, wr2, b2)

    return out_p[:n, :f_out]


def build_mean_adj(edge_index, num_nodes):
    """Dense mean-aggregation matrix matching PyG scatter-mean over incoming edges."""
    src = edge_index[0]
    dst = edge_index[1]
    adj = jnp.zeros((num_nodes, num_nodes), jnp.float32).at[dst, src].add(1.0)
    deg = adj.sum(axis=1, keepdims=True)
    return adj / jnp.maximum(deg, 1.0)


def init_params(key, in_channels, hidden_channels, out_channels):
    """Deterministic synthetic parameters matching SAGEConv((-1,-1), C) shapes."""
    ks = jax.random.split(key, 6)

    def lin(k, fan_in, fan_out):
        scale = 1.0 / jnp.sqrt(jnp.float32(fan_in))
        return jax.random.uniform(k, (fan_in, fan_out), jnp.float32, -scale, scale)

    return {
        "w_l1": lin(ks[0], in_channels, hidden_channels),
        "w_r1": lin(ks[1], in_channels, hidden_channels),
        "b1": jax.random.uniform(ks[2], (hidden_channels,), jnp.float32, -0.1, 0.1),
        "w_l2": lin(ks[3], hidden_channels, out_channels),
        "w_r2": lin(ks[4], hidden_channels, out_channels),
        "b2": jax.random.uniform(ks[5], (out_channels,), jnp.float32, -0.1, 0.1),
    }


def gnn_reference(x, adj_mean, params):
    """Pure-JAX f32 reference (PyG SAGEConv semantics)."""
    h = jnp.maximum(
        adj_mean @ x @ params["w_l1"] + x @ params["w_r1"] + params["b1"], 0.0)
    return adj_mean @ h @ params["w_l2"] + h @ params["w_r2"] + params["b2"]


if __name__ == "__main__":
    num_nodes = 16
    in_channels = 8
    hidden_channels = 32
    out_channels = 16
    num_edges = 48

    root = jax.random.PRNGKey(0)
    k_x, k_src, k_dst, k_params = jax.random.split(root, 4)

    x = jax.random.normal(k_x, (num_nodes, in_channels), jnp.float32)
    src = jax.random.randint(k_src, (num_edges,), 0, num_nodes, jnp.int32)
    dst = jax.random.randint(k_dst, (num_edges,), 0, num_nodes, jnp.int32)
    edge_index = jnp.stack([src, dst], axis=0)  # [2, num_edges]

    params = init_params(k_params, in_channels, hidden_channels, out_channels)
    adj_mean = build_mean_adj(edge_index, num_nodes)

    # Pad + cast ONCE, outside the per-inference hot path (review item 3).
    arrays, meta = prepare_gnn_inputs(x, adj_mean, params)

    out = gnn_forward_padded(*arrays, **meta)
    jax.block_until_ready(out)

    assert out.shape == (num_nodes, out_channels)
    assert out.dtype == jnp.float32

    # Numerical sanity check vs f32 reference (kernel uses bf16 operands / f32 accum).
    ref = gnn_reference(x, adj_mean, params)
    err = float(jnp.max(jnp.abs(out - ref)))
    assert err < 0.1, f"max abs error too large: {err}"

    print("KERNEL_OK")
</pallas_src>

<mosaic_0001>
module attributes {stable_mosaic.version = 11 : i64} {
  func.func @_fused_gnn_kernel(%arg0: i32, %arg1: i32, %arg2: memref<16x16xbf16, #tpu.memory_space<vmem>>, %arg3: memref<16x128xbf16, #tpu.memory_space<vmem>>, %arg4: memref<128x128xbf16, #tpu.memory_space<vmem>>, %arg5: memref<128x128xbf16, #tpu.memory_space<vmem>>, %arg6: memref<1x128xf32, #tpu.memory_space<vmem>>, %arg7: memref<128x128xbf16, #tpu.memory_space<vmem>>, %arg8: memref<128x128xbf16, #tpu.memory_space<vmem>>, %arg9: memref<1x128xf32, #tpu.memory_space<vmem>>, %arg10: memref<16x128xf32, #tpu.memory_space<vmem>>, %arg11: memref<16x128xbf16, #tpu.memory_space<vmem>>, %arg12: memref<16x128xbf16, #tpu.memory_space<vmem>>, %arg13: memref<16x128xbf16, #tpu.memory_space<vmem>>, %arg14: memref<16x128xbf16, #tpu.memory_space<vmem>>) attributes {dimension_semantics = [#tpu.dimension_semantics<arbitrary>, #tpu.dimension_semantics<arbitrary>], iteration_bounds = array<i64: 2, 1>, scalar_prefetch = 0 : i64, scratch_operands = 4 : i64, tpu.core_type = #tpu.core_type<tc>, window_params = [{pipeline_mode = #tpu.pipeline_mode<synchronous>, transform_indices = @transform_0, window_bounds = array<i64: 16, 16>}, {pipeline_mode = #tpu.pipeline_mode<synchronous>, transform_indices = @transform_1, window_bounds = array<i64: 16, 128>}, {pipeline_mode = #tpu.pipeline_mode<synchronous>, transform_indices = @transform_2, window_bounds = array<i64: 128, 128>}, {pipeline_mode = #tpu.pipeline_mode<synchronous>, transform_indices = @transform_3, window_bounds = array<i64: 128, 128>}, {pipeline_mode = #tpu.pipeline_mode<synchronous>, transform_indices = @transform_4, window_bounds = array<i64: 1, 128>}, {pipeline_mode = #tpu.pipeline_mode<synchronous>, transform_indices = @transform_5, window_bounds = array<i64: 128, 128>}, {pipeline_mode = #tpu.pipeline_mode<synchronous>, transform_indices = @transform_6, window_bounds = array<i64: 128, 128>}, {pipeline_mode = #tpu.pipeline_mode<synchronous>, transform_indices = @transform_7, window_bounds = array<i64: 1, 128>}, {transform_indices = @transform_8, window_bounds = array<i64: 16, 128>}]} {
    %c16_i32 = arith.constant 16 : i32
    %0 = arith.muli %arg1, %c16_i32 : i32
    %1 = tpu.assume_multiple %0, 16 : i32
    %c0_i32 = arith.constant 0 : i32
    %2 = arith.cmpi eq, %arg0, %c0_i32 : i32
    %c0_i32_0 = arith.constant 0 : i32
    %3 = arith.cmpi eq, %arg1, %c0_i32_0 : i32
    %4 = arith.andi %2, %3 : i1
    %5 = arith.extui %4 : i1 to i32
    %c0_i32_1 = arith.constant 0 : i32
    %6 = arith.cmpi ne, %5, %c0_i32_1 : i32
    scf.if %6 {
      %c0_5 = arith.constant 0 : index
      %c0_6 = arith.constant 0 : index
      %15 = vector.load %arg3[%c0_5, %c0_6] : memref<16x128xbf16, #tpu.memory_space<vmem>>, vector<16x128xbf16>
      %c0_7 = arith.constant 0 : index
      %c0_8 = arith.constant 0 : index
      %16 = vector.load %arg4[%c0_7, %c0_8] : memref<128x128xbf16, #tpu.memory_space<vmem>>, vector<128x128xbf16>
      %cst = arith.constant dense<0.000000e+00> : vector<16x128xf32>
      %17 = tpu.matmul %15, %16, %cst {dimension_numbers = #tpu.dot_dimension_numbers<[1], [0], [0], [1], [0, 0, 1, 1], [], []>} : vector<16x128xbf16>, vector<128x128xbf16>, vector<16x128xf32> -> vector<16x128xf32>
      %18 = arith.truncf %17 : vector<16x128xf32> to vector<16x128xbf16>
      %c0_9 = arith.constant 0 : index
      %c0_10 = arith.constant 0 : index
      %19 = vector.load %arg11[%c0_9, %c0_10] : memref<16x128xbf16, #tpu.memory_space<vmem>>, vector<16x128xbf16>
      tpu.vector_store %arg11[%c0_9, %c0_10], %18 {strides = array<i32>} : memref<16x128xbf16, #tpu.memory_space<vmem>>, vector<16x128xbf16>,
      %c0_11 = arith.constant 0 : index
      %c0_12 = arith.constant 0 : index
      %20 = vector.load %arg5[%c0_11, %c0_12] : memref<128x128xbf16, #tpu.memory_space<vmem>>, vector<128x128xbf16>
      %cst_13 = arith.constant dense<0.000000e+00> : vector<16x128xf32>
      %21 = tpu.matmul %15, %20, %cst_13 {dimension_numbers = #tpu.dot_dimension_numbers<[1], [0], [0], [1], [0, 0, 1, 1], [], []>} : vector<16x128xbf16>, vector<128x128xbf16>, vector<16x128xf32> -> vector<16x128xf32>
      %c0_14 = arith.constant 0 : index
      %c0_15 = arith.constant 0 : index
      %22 = vector.load %arg6[%c0_14, %c0_15] : memref<1x128xf32, #tpu.memory_space<vmem>>, vector<1x128xf32>
      %23 = vector.broadcast %22 : vector<1x128xf32> to vector<16x128xf32>
      %24 = arith.addf %21, %23 : vector<16x128xf32>
      %25 = arith.truncf %24 : vector<16x128xf32> to vector<16x128xbf16>
      %c0_16 = arith.constant 0 : index
      %c0_17 = arith.constant 0 : index
      %26 = vector.load %arg12[%c0_16, %c0_17] : memref<16x128xbf16, #tpu.memory_space<vmem>>, vector<16x128xbf16>
      tpu.vector_store %arg12[%c0_16, %c0_17], %25 {strides = array<i32>} : memref<16x128xbf16, #tpu.memory_space<vmem>>, vector<16x128xbf16>,
    } else {
    }
    %7 = arith.index_cast %1 : i32 to index
    %c0 = arith.constant 0 : index
    %8 = vector.load %arg2[%7, %c0] : memref<16x16xbf16, #tpu.memory_space<vmem>>, vector<16x16xbf16>
    %c0_i32_2 = arith.constant 0 : i32
    %9 = arith.cmpi eq, %arg0, %c0_i32_2 : i32
    %10 = arith.extui %9 : i1 to i32
    %c0_i32_3 = arith.constant 0 : i32
    %11 = arith.cmpi ne, %10, %c0_i32_3 : i32
    scf.if %11 {
      %c0_5 = arith.constant 0 : index
      %c0_6 = arith.constant 0 : index
      %15 = vector.load %arg11[%c0_5, %c0_6] : memref<16x128xbf16, #tpu.memory_space<vmem>>, vector<16x128xbf16>
      %cst = arith.constant dense<0.000000e+00> : vector<16x128xf32>
      %16 = tpu.matmul %8, %15, %cst {dimension_numbers = #tpu.dot_dimension_numbers<[1], [0], [0], [1], [0, 0, 1, 1], [], []>} : vector<16x16xbf16>, vector<16x128xbf16>, vector<16x128xf32> -> vector<16x128xf32>
      %17 = arith.index_cast %1 : i32 to index
      %c0_7 = arith.constant 0 : index
      %18 = vector.load %arg12[%17, %c0_7] : memref<16x128xbf16, #tpu.memory_space<vmem>>, vector<16x128xbf16>
      %19 = arith.extf %18 : vector<16x128xbf16> to vector<16x128xf32>
      %20 = arith.addf %16, %19 : vector<16x128xf32>
      %cst_8 = arith.constant 0.000000e+00 : f32
      %21 = vector.broadcast %cst_8 : f32 to vector<16x128xf32>
      %22 = arith.maximumf %20, %21 : vector<16x128xf32>
      %23 = arith.truncf %22 : vector<16x128xf32> to vector<16x128xbf16>
      %c0_9 = arith.constant 0 : index
      %c0_10 = arith.constant 0 : index
      %24 = vector.load %arg7[%c0_9, %c0_10] : memref<128x128xbf16, #tpu.memory_space<vmem>>, vector<128x128xbf16>
      %cst_11 = arith.constant dense<0.000000e+00> : vector<16x128xf32>
      %25 = tpu.matmul %23, %24, %cst_11 {dimension_numbers = #tpu.dot_dimension_numbers<[1], [0], [0], [1], [0, 0, 1, 1], [], []>} : vector<16x128xbf16>, vector<128x128xbf16>, vector<16x128xf32> -> vector<16x128xf32>
      %26 = arith.truncf %25 : vector<16x128xf32> to vector<16x128xbf16>
      %27 = arith.index_cast %1 : i32 to index
      %c0_12 = arith.constant 0 : index
      %28 = vector.load %arg13[%27, %c0_12] : memref<16x128xbf16, #tpu.memory_space<vmem>>, vector<16x128xbf16>
      tpu.vector_store %arg13[%27, %c0_12], %26 {strides = array<i32>} : memref<16x128xbf16, #tpu.memory_space<vmem>>, vector<16x128xbf16>,
      %c0_13 = arith.constant 0 : index
      %c0_14 = arith.constant 0 : index
      %29 = vector.load %arg8[%c0_13, %c0_14] : memref<128x128xbf16, #tpu.memory_space<vmem>>, vector<128x128xbf16>
      %cst_15 = arith.constant dense<0.000000e+00> : vector<16x128xf32>
      %30 = tpu.matmul %23, %29, %cst_15 {dimension_numbers = #tpu.dot_dimension_numbers<[1], [0], [0], [1], [0, 0, 1, 1], [], []>} : vector<16x128xbf16>, vector<128x128xbf16>, vector<16x128xf32> -> vector<16x128xf32>
      %c0_16 = arith.constant 0 : index
      %c0_17 = arith.constant 0 : index
      %31 = vector.load %arg9[%c0_16, %c0_17] : memref<1x128xf32, #tpu.memory_space<vmem>>, vector<1x128xf32>
      %32 = vector.broadcast %31 : vector<1x128xf32> to vector<16x128xf32>
      %33 = arith.addf %30, %32 : vector<16x128xf32>
      %34 = arith.truncf %33 : vector<16x128xf32> to vector<16x128xbf16>
      %35 = arith.index_cast %1 : i32 to index
      %c0_18 = arith.constant 0 : index
      %36 = vector.load %arg14[%35, %c0_18] : memref<16x128xbf16, #tpu.memory_space<vmem>>, vector<16x128xbf16>
      tpu.vector_store %arg14[%35, %c0_18], %34 {strides = array<i32>} : memref<16x128xbf16, #tpu.memory_space<vmem>>, vector<16x128xbf16>,
    } else {
    }
    %c1_i32 = arith.constant 1 : i32
    %12 = arith.cmpi eq, %arg0, %c1_i32 : i32
    %13 = arith.extui %12 : i1 to i32
    %c0_i32_4 = arith.constant 0 : i32
    %14 = arith.cmpi ne, %13, %c0_i32_4 : i32
    scf.if %14 {
      %c0_5 = arith.constant 0 : index
      %c0_6 = arith.constant 0 : index
      %15 = vector.load %arg13[%c0_5, %c0_6] : memref<16x128xbf16, #tpu.memory_space<vmem>>, vector<16x128xbf16>
      %cst = arith.constant dense<0.000000e+00> : vector<16x128xf32>
      %16 = tpu.matmul %8, %15, %cst {dimension_numbers = #tpu.dot_dimension_numbers<[1], [0], [0], [1], [0, 0, 1, 1], [], []>} : vector<16x16xbf16>, vector<16x128xbf16>, vector<16x128xf32> -> vector<16x128xf32>
      %17 = arith.index_cast %1 : i32 to index
      %c0_7 = arith.constant 0 : index
      %18 = vector.load %arg14[%17, %c0_7] : memref<16x128xbf16, #tpu.memory_space<vmem>>, vector<16x128xbf16>
      %19 = arith.extf %18 : vector<16x128xbf16> to vector<16x128xf32>
      %20 = arith.addf %16, %19 : vector<16x128xf32>
      %c0_8 = arith.constant 0 : index
      %c0_9 = arith.constant 0 : index
      %21 = vector.load %arg10[%c0_8, %c0_9] : memref<16x128xf32, #tpu.memory_space<vmem>>, vector<16x128xf32>
      tpu.vector_store %arg10[%c0_8, %c0_9], %20 {strides = array<i32>} : memref<16x128xf32, #tpu.memory_space<vmem>>, vector<16x128xf32>,
    } else {
    }
    return
  }
  func.func @transform_0(%arg0: i32, %arg1: i32) -> (i32, i32) {
    %c0_i32 = arith.constant 0 : i32
    %c0_i32_0 = arith.constant 0 : i32
    %c0_i32_1 = arith.constant 0 : i32
    return %c0_i32, %c0_i32_0 : i32, i32
  }
  func.func @transform_1(%arg0: i32, %arg1: i32) -> (i32, i32) {
    %c0_i32 = arith.constant 0 : i32
    %c0_i32_0 = arith.constant 0 : i32
    %c0_i32_1 = arith.constant 0 : i32
    return %c0_i32, %c0_i32_0 : i32, i32
  }
  func.func @transform_2(%arg0: i32, %arg1: i32) -> (i32, i32) {
    %c0_i32 = arith.constant 0 : i32
    %c0_i32_0 = arith.constant 0 : i32
    %c0_i32_1 = arith.constant 0 : i32
    return %c0_i32, %c0_i32_0 : i32, i32
  }
  func.func @transform_3(%arg0: i32, %arg1: i32) -> (i32, i32) {
    %c0_i32 = arith.constant 0 : i32
    %c0_i32_0 = arith.constant 0 : i32
    %c0_i32_1 = arith.constant 0 : i32
    return %c0_i32, %c0_i32_0 : i32, i32
  }
  func.func @transform_4(%arg0: i32, %arg1: i32) -> (i32, i32) {
    %c0_i32 = arith.constant 0 : i32
    %c0_i32_0 = arith.constant 0 : i32
    %c0_i32_1 = arith.constant 0 : i32
    return %c0_i32, %c0_i32_0 : i32, i32
  }
  func.func @transform_5(%arg0: i32, %arg1: i32) -> (i32, i32) {
    %c0_i32 = arith.constant 0 : i32
    %c0_i32_0 = arith.constant 0 : i32
    %c0_i32_1 = arith.constant 0 : i32
    return %c0_i32, %c0_i32_0 : i32, i32
  }
  func.func @transform_6(%arg0: i32, %arg1: i32) -> (i32, i32) {
    %c0_i32 = arith.constant 0 : i32
    %c0_i32_0 = arith.constant 0 : i32
    %c0_i32_1 = arith.constant 0 : i32
    return %c0_i32, %c0_i32_0 : i32, i32
  }
  func.func @transform_7(%arg0: i32, %arg1: i32) -> (i32, i32) {
    %c0_i32 = arith.constant 0 : i32
    %c0_i32_0 = arith.constant 0 : i32
    %c0_i32_1 = arith.constant 0 : i32
    return %c0_i32, %c0_i32_0 : i32, i32
  }
  func.func @transform_8(%arg0: i32, %arg1: i32) -> (i32, i32) {
    %0 = arith.muli %arg0, %arg1 : i32
    %c0_i32 = arith.constant 0 : i32
    %c0_i32_0 = arith.constant 0 : i32
    return %0, %c0_i32 : i32, i32
  }
}

</mosaic_0001>

<bundles_post_ra>
// kernel: gnn_forward_padded.1
= control target key start
LH: loop header
LB: loop body
LE: loop exit
PB: predicated region body
PF: predicated region fallthrough
CT: control target
= control target key end

     0   :  { %s2015_s0 = inlined_call_operand.hbm [shape: bf16[16,16], index: 0, kind: input, shape index: {}]   ;;  %s2016_s1 = inlined_call_operand.hbm [shape: bf16[16,128], index: 1, kind: input, shape index: {}]   ;;  %s2017_s2 = inlined_call_operand.hbm [shape: bf16[128,128], index: 2, kind: input, shape index: {}]   ;;  %s2018_s3 = inlined_call_operand.hbm [shape: bf16[128,128], index: 3, kind: input, shape index: {}]   ;;  %s2019_s4 = inlined_call_operand.vmem [shape: f32[1,128], index: 4, kind: input, shape index: {}]   ;;  %s2020_s5 = inlined_call_operand.hbm [shape: bf16[128,128], index: 5, kind: input, shape index: {}]   ;;  %s2021_s6 = inlined_call_operand.hbm [shape: bf16[128,128], index: 6, kind: input, shape index: {}]   ;;  %s2022_s7 = inlined_call_operand.vmem [shape: f32[1,128], index: 7, kind: input, shape index: {}]   ;;  %s2023_s8 = inlined_call_operand.hbm [shape: f32[16,128], index: 8, kind: output, shape index: {}]  }
   0x1   :  { %2028 = sst [smem:[#allocation23_spill]] %s2016_s1 }
   0x2   :  { %13 = vsyncpa [#allocation7], 0 }
   0x3   :  { %14 = vsyncpa [#allocation10], 0 }
   0x4   :  { %15 = vsyncpa [#allocation13], 0 }
   0x5   :  { %16 = vsyncpa [#allocation16], 0 }
   0x6   :  { %17 = vsyncpa [#allocation8], 0 }
   0x7   :  { %19 = vsyncpa [#allocation8 + $0x1], 0  ;;  %s1762_s27 = smov 0   ;;  %s1764_s28 = smov 0  }
   0x8   :  { %s1766_s29 = smov 0  }
   0x9 LB: > { %s2027_s30 = sadd.s32 4294967295, %s1698_s29   ;;  %p1129_p0 = scmp.ge.s32.totalorder %s1698_s29, 1  ;;  %s1698_s29 = sphi %s1766_s29, %s25_s29   ;;  %s1694_s28 = sphi %s1764_s28, %s2040_s28   ;;  %s1690_s27 = sphi %s1762_s27, %s2039_s27  }
   0xa   : > { %p238_p1 = scmp.lt.s32.totalorder %s1698_s29, 3  ;;  %p1783_p2 = scmp.eq.s32.totalorder %s2027_s30, 0 }
   0xb   : > { %s1700_s12 = smov [#allocation9]   ;;  %s1701_s14 = smov [#allocation12]  }
   0xc   : > { %s2029_s10 = scalar_select %p1783_p2, 1, 0 }
   0xd   : > { %p1787_p3 = pnand %p1129_p0, %p238_p1  ;;  %s263_s13 = sshll.u32 %s1700_s12, 4  ;;  %s264_s13 = int_to_ptr.vmem [resolvable:$true] %s263_s13 }
   0xe   : > { %s289_s15 = sshll.u32 %s1701_s14, 4  ;;  %s2032_s1 = sld [smem:[#allocation23_spill]]  ;;  %s1799_s15 = int_to_ptr.vmem [resolvable:$true] %s289_s15 }
   0xf   : > { %s2030_s11 = scalar_select %p1787_p3, 1, 0 }
  0x10   : > { %p1350_p4 = pneg %p1787_p3 }
  0x12   : > { %p1795_p5 = pnand %p1783_p2, %p1350_p4 }
  0x14   : > { %s1462_s19 = scalar_lea.hbm %s2032_s1, 128  ;;  %p1809_p7 = pneg %p1795_p5 }
  0x15   : > { %p1463_p6 = scmp.ne.s32.totalorder %s2032_s1, %s1462_s19  ;;  %p1469_p10 = scmp.lt.u32.totalorder %s1462_s19, %s2032_s1 }
  0x17   : > { %p1465_p8 = pnand %p1809_p7, %p1463_p6 }
  0x19   : > { %p1466_p9 = pneg %p1465_p8 }
  0x1b   : > { %p1471_p11 = pnand %p1469_p10, %p1466_p9 }
  0x1d   : > { %1474 = shalt.err (!%p1471_p11)
}
  0x1e   : > { %s1475_s25 = scalar_lea.vmem %s264_s13, 128  ;;  %p1483_p1 = scmp.lt.s32.totalorder %s264_s13, %s264_s13 }
  0x1f   : > { %p1476_p12 = scmp.ne.s32.totalorder %s264_s13, %s1475_s25  ;;  %p1484_p4 = scmp.lt.s32.totalorder %s1475_s25, %s1475_s25 }
  0x21   : > { %p1478_p13 = pnand %p1476_p12, %p1809_p7  ;;  %p1485_p2 = por %p1484_p4, %p1483_p1 }
  0x23   : > { %p1479_p0 = pneg %p1478_p13 }
  0x25   : > { %p1486_p3 = pnand %p1485_p2, %p1479_p0 }
  0x27   : > { %1489 = shalt.err (!%p1486_p3)
}
  0x28   : > { %s1702_s26 = smov 64   ;;  %s1703_s12 = smov 4  }
  0x29   : > { %1356 = dma.hbm_to_vmem [thread:$0]  (!%p1795_p5), %s2032_s1, 128, %s264_s13, [#allocation10], %s1702_s26, %s1702_s26, %s1703_s12  }
  0x2a   : > { %s1490_s20 = scalar_lea.hbm %s2018_s3, 1024 }
  0x2b   : > { %p1491_p2 = scmp.ne.s32.totalorder %s2018_s3, %s1490_s20  ;;  %p1497_p8 = scmp.lt.u32.totalorder %s1490_s20, %s2018_s3 }
  0x2d   : > { %p1493_p3 = pnand %p1491_p2, %p1809_p7 }
  0x2f   : > { %p1494_p6 = pneg %p1493_p3 }
  0x31   : > { %p1499_p9 = pnand %p1497_p8, %p1494_p6 }
  0x33   : > { %1502 = shalt.err (!%p1499_p9)
}
  0x34   : > { %s1503_s13 = scalar_lea.vmem %s1799_s15, 1024  ;;  %p1511_p13 = scmp.lt.s32.totalorder %s1799_s15, %s1799_s15 }
  0x35   : > { %p1504_p10 = scmp.ne.s32.totalorder %s1799_s15, %s1503_s13  ;;  %p1512_p0 = scmp.lt.s32.totalorder %s1503_s13, %s1503_s13 }
  0x37   : > { %p1506_p11 = pnand %p1504_p10, %p1809_p7  ;;  %p1513_p1 = por %p1512_p0, %p1511_p13 }
  0x39   : > { %p1507_p12 = pneg %p1506_p11 }
  0x3b   : > { %p1514_p4 = pnand %p1513_p1, %p1507_p12 }
  0x3d   : > { %1517 = shalt.err (!%p1514_p4)
}
  0x3e   : > { %1362 = dma.hbm_to_vmem [thread:$0]  (!%p1795_p5), %s2018_s3, 1024, %s1799_s15, [#allocation13], %s1702_s26, %s1702_s26, %s1703_s12  }
  0x3f   : > { %s37_s18 = sadd.s32 1, %s1694_s28  ;;  %s1704_s19 = smov [#allocation6]  }
  0x40   : > { %p39_p2 = scmp.ge.s32.totalorder %s37_s18, 2  ;;  %s250_s20 = sshll.u32 %s1704_s19, 4  ;;  %s251_s20 = int_to_ptr.vmem [resolvable:$true] %s250_s20 }
  0x41   : > { %s1518_s24 = scalar_lea.hbm %s2015_s0, 128 }
  0x42   : > { %s2042_s18 = smov (%p39_p2, %s37_s18), 0  ;;  %p1519_p3 = scmp.ne.s32.totalorder %s2015_s0, %s1518_s24 }
  0x43   : > { %p1525_p9 = scmp.lt.u32.totalorder %s1518_s24, %s2015_s0 }
  0x44   : > { %p1521_p6 = pnand %p1519_p3, %p1809_p7 }
  0x46   : > { %p1522_p8 = pneg %p1521_p6 }
  0x48   : > { %p1527_p10 = pnand %p1525_p9, %p1522_p8 }
  0x4a   : > { %1530 = shalt.err (!%p1527_p10)
}
  0x4b   : > { %s1531_s17 = scalar_lea.vmem %s251_s20, 128  ;;  %p1539_p0 = scmp.lt.s32.totalorder %s251_s20, %s251_s20 }
  0x4c   : > { %p1532_p11 = scmp.ne.s32.totalorder %s251_s20, %s1531_s17  ;;  %p1540_p1 = scmp.lt.s32.totalorder %s1531_s17, %s1531_s17 }
  0x4e   : > { %p1534_p12 = pnand %p1532_p11, %p1809_p7  ;;  %p1541_p4 = por %p1540_p1, %p1539_p0 }
  0x50   : > { %p1535_p13 = pneg %p1534_p12 }
  0x52   : > { %p1542_p2 = pnand %p1541_p4, %p1535_p13 }
  0x54   : > { %1545 = shalt.err (!%p1542_p2)
}
  0x55   : > { %1353 = dma.hbm_to_vmem [thread:$0]  (!%p1795_p5), %s2015_s0, 128, %s251_s20, [#allocation7], %s1702_s26, %s1702_s26, %s1703_s12  }
  0x56   : > { %s1705_s23 = smov [#allocation11]   ;;  %s1706_s25 = smov [#allocation14]  }
  0x57   : > { %s276_s24 = sshll.u32 %s1705_s23, 4  ;;  %s305_s13 = sshll.u32 %s1706_s25, 4  ;;  %s277_s24 = int_to_ptr.vmem [resolvable:$true] %s276_s24  ;;  %s306_s13 = int_to_ptr.vmem [resolvable:$true] %s305_s13 }
  0x58   : > { %s1546_s17 = scalar_lea.hbm %s2017_s2, 1024 }
  0x59   : > { %p1547_p3 = scmp.ne.s32.totalorder %s2017_s2, %s1546_s17  ;;  %p1553_p9 = scmp.lt.u32.totalorder %s1546_s17, %s2017_s2 }
  0x5b   : > { %p1549_p6 = pnand %p1547_p3, %p1809_p7 }
  0x5d   : > { %p1550_p8 = pneg %p1549_p6 }
  0x5f   : > { %p1555_p10 = pnand %p1553_p9, %p1550_p8 }
  0x61   : > { %1558 = shalt.err (!%p1555_p10)
}
  0x62   : > { %s1559_s20 = scalar_lea.vmem %s277_s24, 1024  ;;  %p1567_p0 = scmp.lt.s32.totalorder %s277_s24, %s277_s24 }
  0x63   : > { %p1560_p11 = scmp.ne.s32.totalorder %s277_s24, %s1559_s20  ;;  %p1568_p1 = scmp.lt.s32.totalorder %s1559_s20, %s1559_s20 }
  0x65   : > { %p1562_p12 = pnand %p1560_p11, %p1809_p7  ;;  %p1569_p4 = por %p1568_p1, %p1567_p0 }
  0x67   : > { %p1563_p13 = pneg %p1562_p12 }
  0x69   : > { %p1570_p2 = pnand %p1569_p4, %p1563_p13 }
  0x6b   : > { %1573 = shalt.err (!%p1570_p2)
}
  0x6c   : > { %1359 = dma.hbm_to_vmem [thread:$0]  (!%p1795_p5), %s2017_s2, 1024, %s277_s24, [#allocation10], %s1702_s26, %s1702_s26, %s1703_s12  }
  0x6d   : > { %s1574_s23 = scalar_lea.hbm %s2020_s5, 1024 }
  0x6e   : > { %p1575_p3 = scmp.ne.s32.totalorder %s2020_s5, %s1574_s23  ;;  %p1581_p9 = scmp.lt.u32.totalorder %s1574_s23, %s2020_s5 }
  0x70   : > { %p1577_p6 = pnand %p1575_p3, %p1809_p7 }
  0x72   : > { %p1578_p8 = pneg %p1577_p6 }
  0x74   : > { %p1583_p10 = pnand %p1581_p9, %p1578_p8 }
  0x76   : > { %1586 = shalt.err (!%p1583_p10)
}
  0x77   : > { %s1587_s19 = scalar_lea.vmem %s306_s13, 1024  ;;  %p1595_p0 = scmp.lt.s32.totalorder %s306_s13, %s306_s13 }
  0x78   : > { %p1588_p11 = scmp.ne.s32.totalorder %s306_s13, %s1587_s19  ;;  %p1596_p1 = scmp.lt.s32.totalorder %s1587_s19, %s1587_s19 }
  0x7a   : > { %p1590_p12 = pnand %p1588_p11, %p1809_p7  ;;  %p1597_p4 = por %p1596_p1, %p1595_p0 }
  0x7c   : > { %p1591_p13 = pneg %p1590_p12 }
  0x7e   : > { %p1598_p2 = pnand %p1597_p4, %p1591_p13 }
  0x80   : > { %1601 = shalt.err (!%p1598_p2)
}
  0x81   : > { %1365 = dma.hbm_to_vmem [thread:$0]  (!%p1795_p5), %s2020_s5, 1024, %s306_s13, [#allocation13], %s1702_s26, %s1702_s26, %s1703_s12  }
  0x82   : > { %s1707_s1 = smov [#allocation15]   ;;  %s1602_s23 = scalar_lea.hbm %s2021_s6, 1024 }
  0x83   : > { %s318_s30 = sshll.u32 %s1707_s1, 4  ;;  %p1603_p3 = scmp.ne.s32.totalorder %s2021_s6, %s1602_s23  ;;  %s319_s30 = int_to_ptr.vmem [resolvable:$true] %s318_s30 }
  0x84   : > { %p1609_p9 = scmp.lt.u32.totalorder %s1602_s23, %s2021_s6 }
  0x85   : > { %p1605_p6 = pnand %p1603_p3, %p1809_p7 }
  0x87   : > { %p1606_p8 = pneg %p1605_p6 }
  0x89   : > { %p1611_p10 = pnand %p1609_p9, %p1606_p8 }
  0x8b   : > { %1614 = shalt.err (!%p1611_p10)
}
  0x8c   : > { %s1615_s13 = scalar_lea.vmem %s319_s30, 1024  ;;  %p1623_p0 = scmp.lt.s32.totalorder %s319_s30, %s319_s30 }
  0x8d   : > { %p1616_p11 = scmp.ne.s32.totalorder %s319_s30, %s1615_s13  ;;  %p1624_p1 = scmp.lt.s32.totalorder %s1615_s13, %s1615_s13 }
  0x8f   : > { %p1618_p12 = pnand %p1616_p11, %p1809_p7  ;;  %p1625_p4 = por %p1624_p1, %p1623_p0 }
  0x91   : > { %p1619_p13 = pneg %p1618_p12 }
  0x93   : > { %p1626_p2 = pnand %p1625_p4, %p1619_p13 }
  0x95   : > { %1629 = shalt.err (!%p1626_p2)
}
  0x96   : > { %1368 = dma.hbm_to_vmem [thread:$0]  (!%p1795_p5), %s2021_s6, 1024, %s319_s30, [#allocation16], %s1702_s26, %s1702_s26, %s1703_s12  }
  0x97   : > { %p2034_p3 = scmp.ne.s32.totalorder %s2030_s11, 0 }
  0x98   : > { %p2035_p7 = scmp.ne.s32.totalorder (!%p2034_p3), %s2029_s10, 0 }
  0x99   : > { %337 = sbr.rel (%p2034_p3) target bundleno = 1116 (0x45c), region = 52 }
  0xa0   : > { %1669 = dma.done.wait (%p2035_p7), [#allocation7], 128  }
  0xa1   : > { %1671 = vsyncadd (%p2035_p7), [#allocation7], 4294967168 }
  0xa2   : > { %1673 = dma.done.wait (%p2035_p7), [#allocation10], 1152  }
  0xa3   : > { %1675 = vsyncadd (%p2035_p7), [#allocation10], 4294966144 }
  0xa4   : > { %1677 = dma.done.wait (%p2035_p7), [#allocation13], 2048  }
  0xa5   : > { %1679 = vsyncadd (%p2035_p7), [#allocation13], 4294965248 }
  0xa6   : > { %1681 = dma.done.wait (%p2035_p7), [#allocation16], 1024  }
  0xa7   : > { %1683 = vsyncadd (%p2035_p7), [#allocation16], 4294966272  ;;  %p390_p5 = scmp.eq.s32.totalorder %s1690_s27, 0 }
  0xa8   : > { %v1429_v0 = vld [vmem:[#allocation11] sm:$0xff] (%p390_p5)   ;;  %v1708_v1 = vmov (%p390_p5), 0.0   ;;  %v1431_v3 = vld [vmem:[#allocation11 + $0x8] sm:$0xff] (%p390_p5)   ;;  %vm1709_vm0 = vmmov (%p390_p5), 0   ;;  %v1433_v5 = vld [vmem:[#allocation11 + $0x10] sm:$0xff] (%p390_p5)  }
  0xa9   : > { %395 = sbr.rel (!%p390_p5) target bundleno = 421 (0x1a5), region = 80  ;;  %1230 = vmatprep.subr.bf16.mxu0 (%p390_p5), %v1708_v1  ;;  %1250 = vmatprep.subr.bf16.mxu1 (%p390_p5), %v1708_v1  ;;  %v1430_v2 = vld [vmem:[#allocation12] sm:$0xff] (%p390_p5)   ;;  %v1432_v4 = vld [vmem:[#allocation12 + $0x8] sm:$0xff] (%p390_p5)   ;;  %v1434_v6 = vld [vmem:[#allocation12 + $0x10] sm:$0xff] (%p390_p5)  }
  0xaa   : > { %1231 = vmatpush3.bf16.msra.mxu0 (%p390_p5), %v1429_v0  ;;  %1246 = vmatprep.mubr.msk.bf16.mxu0 (%p390_p5), %vm1709_vm0, %v1708_v1  ;;  %v1435_v7 = vld [vmem:[#allocation11 + $0x18] sm:$0xff] (%p390_p5)   ;;  %v1437_v9 = vld [vmem:[#allocation11 + $0x20] sm:$0xff] (%p390_p5)   ;;  %v1439_v11 = vld [vmem:[#allocation11 + $0x28] sm:$0xff] (%p390_p5)  }
  0xab   : > { %1251 = vmatpush3.bf16.msra.mxu1 (%p390_p5), %v1430_v2  ;;  %1232 = vmatprep.subr.bf16.mxu0 (%p390_p5), %v1708_v1  ;;  %v1436_v8 = vld [vmem:[#allocation12 + $0x18] sm:$0xff] (%p390_p5)   ;;  %v1438_v10 = vld [vmem:[#allocation12 + $0x20] sm:$0xff] (%p390_p5)   ;;  %v1440_v12 = vld [vmem:[#allocation12 + $0x28] sm:$0xff] (%p390_p5)  }
  0xac   : > { %1252 = vmatprep.subr.bf16.mxu1 (%p390_p5), %v1708_v1  ;;  %1266 = vmatprep.mubr.msk.bf16.mxu1 (%p390_p5), %vm1709_vm0, %v1708_v1  ;;  %v1441_v13 = vld [vmem:[#allocation11 + $0x30] sm:$0xff] (%p390_p5)   ;;  %v1443_v15 = vld [vmem:[#allocation11 + $0x38] sm:$0xff] (%p390_p5)  }
  0xad   : > { %v1442_v14 = vld [vmem:[#allocation12 + $0x30] sm:$0xff] (%p390_p5)   ;;  %v1444_v16 = vld [vmem:[#allocation12 + $0x38] sm:$0xff] (%p390_p5)  }
  0xae   : > { %1233 = vmatpush3.bf16.msra.mxu0 (%p390_p5), %v1431_v3  ;;  %v1445_v17 = vld [vmem:[#allocation9] sm:$0xff] (%p390_p5)   ;;  %v1153_v19 = vld [vmem:[%s2019_s4] ss:$0 sm:$0xff] (%p390_p5) }
  0xaf   : > { %1253 = vmatpush3.bf16.msra.mxu1 (%p390_p5), %v1432_v4  ;;  %1234 = vmatprep.subr.bf16.mxu0 (%p390_p5), %v1708_v1 }
  0xb0   : > { %1254 = vmatprep.subr.bf16.mxu1 %v1708_v1 }
  0xb2   : > { %1235 = vmatpush3.bf16.msra.mxu0 %v1433_v5 }
  0xb3   : > { %1255 = vmatpush3.bf16.msra.mxu1 %v1434_v6  ;;  %1236 = vmatprep.subr.bf16.mxu0 %v1708_v1 }
  0xb4   : > { %1256 = vmatprep.subr.bf16.mxu1 %v1708_v1 }
  0xb6   : > { %1237 = vmatpush3.bf16.msra.mxu0 %v1435_v7 }
  0xb7   : > { %1257 = vmatpush3.bf16.msra.mxu1 %v1436_v8  ;;  %1238 = vmatprep.subr.bf16.mxu0 %v1708_v1 }
  0xb8   : > { %1258 = vmatprep.subr.bf16.mxu1 %v1708_v1 }
  0xba   : > { %1239 = vmatpush3.bf16.msra.mxu0 %v1437_v9 }
  0xbb   : > { %1259 = vmatpush3.bf16.msra.mxu1 %v1438_v10  ;;  %1240 = vmatprep.subr.bf16.mxu0 %v1708_v1 }
  0xbc   : > { %1260 = vmatprep.subr.bf16.mxu1 %v1708_v1 }
  0xbe   : > { %1241 = vmatpush3.bf16.msra.mxu0 %v1439_v11 }
  0xbf   : > { %1261 = vmatpush3.bf16.msra.mxu1 %v1440_v12  ;;  %1242 = vmatprep.subr.bf16.mxu0 %v1708_v1 }
  0xc0   : > { %1262 = vmatprep.subr.bf16.mxu1 %v1708_v1 }
  0xc2   : > { %1243 = vmatpush3.bf16.msra.mxu0 %v1441_v13 }
  0xc3   : > { %1263 = vmatpush3.bf16.msra.mxu1 %v1442_v14  ;;  %1244 = vmatprep.subr.bf16.mxu0 %v1708_v1 }
  0xc4   : > { %1264 = vmatprep.subr.bf16.mxu1 %v1708_v1 }
  0xc6   : > { %1245 = vmatpush3.bf16.msra.mxu0 %v1443_v15 }
  0xc7   : > { %1265 = vmatpush3.bf16.msra.mxu1 %v1444_v16 }
  0xc9   : > { %1247 = vmatmul.mubr.bf16.vlgmr.msra.gmra.mrb[0].mxu0 %v1445_v17 }
  0xca   : > { %1267 = vmatmul.mubr.bf16.vlgmr.msra.gmra.mrb[0].mxu1 %v1445_v17 }
 0x19c   : > { %v502_v18 = vpop.f32.mrb[0].mxu0 }
 0x19d   : > { %v616_v20 = vpop.f32.mrb[0].mxu1  ;;  %v1248_v21 = vpop.f32.mrb[1].mxu0 }
 0x19e   : > { %v1268_v22 = vpop.f32.mrb[1].mxu1  ;;  %v505_v23 = vpop.f32.mrb[2].mxu0  ;;  %v617_v27 = vadd.f32 %v1153_v19, %v616_v20 }
 0x19f   : > { %v509_v24 = vpack.c.bf16 %v505_v23, %v502_v18  ;;  %v619_v25 = vpop.f32.mrb[2].mxu1  ;;  %v1249_v26 = vpop.f32.mrb[3].mxu0 }
 0x1a0   : > { %v620_v28 = vadd.f32 %v1153_v19, %v619_v25  ;;  %v1269_v29 = vpop.f32.mrb[3].mxu1 }
 0x1a1   : > { %510 = vst [vmem:[#allocation2] sm:$0xff] %v509_v24 }
 0x1a2   : > { %v623_v30 = vpack.c.bf16 %v620_v28, %v617_v27 }
 0x1a4   : > { %624 = vst [vmem:[#allocation3] sm:$0xff] %v623_v30 }
 0x1a5 PF: > { %v1963_v31 = vld [vmem:[#allocation6] sm:$0xf]  ;;  %v1965_v32 = vld [vmem:[#allocation6 + $0x4] sm:$0xf]  ;;  %p1162_p6 = scmp.ne.s32.totalorder %s1690_s27, 0 }
 0x1a6   : > { %v1710_v34 = vmov (!%p1162_p6), 0.0   ;;  %vm1711_vm1 = vmmov (!%p1162_p6), 0   ;;  %v1163_v35 = vcombine.low (!%p1162_p6), %v1963_v31, %v1965_v32  ;;  %v1446_v36 = vld [vmem:[#allocation14] sm:$0xff] (!%p1162_p6)   ;;  %vm647_vm2 = vcmask (!%p1162_p6), 130048   ;;  %v1448_v38 = vld [vmem:[#allocation14 + $0x8] sm:$0xff] (!%p1162_p6)   ;;  %v1450_v40 = vld [vmem:[#allocation14 + $0x10] sm:$0xff] (!%p1162_p6)  }
 0x1a7   : > { %633 = sbr.rel (%p1162_p6) target bundleno = 867 (0x363), region = 84  ;;  %1270 = vmatprep.subr.bf16.mxu0 (!%p1162_p6), %v1710_v34  ;;  %1272 = vmatprep.mubr.msk.bf16.mxu0 (!%p1162_p6), %vm1711_vm1, %v1710_v34  ;;  %v1447_v37 = vld [vmem:[#allocation15] sm:$0xff] (!%p1162_p6)   ;;  %v1449_v39 = vld [vmem:[#allocation15 + $0x8] sm:$0xff] (!%p1162_p6)   ;;  %v1451_v41 = vld [vmem:[#allocation15 + $0x10] sm:$0xff] (!%p1162_p6)  }
 0x1a8   : > { %v634_v33 = vld [vmem:[#allocation2] sm:$0xff] (!%p1162_p6)  ;;  %1276 = vmatprep.subr.bf16.mxu1 (!%p1162_p6), %v1710_v34  ;;  %1292 = vmatprep.mubr.msk.bf16.mxu1 (!%p1162_p6), %vm1711_vm1, %v1710_v34  ;;  %v1452_v42 = vld [vmem:[#allocation14 + $0x18] sm:$0xff] (!%p1162_p6)   ;;  %v1454_v44 = vld [vmem:[#allocation14 + $0x20] sm:$0xff] (!%p1162_p6)  }
 0x1a9   : > { %1271 = vmatpush3.bf16.msra.mxu0 (!%p1162_p6), %v634_v33  ;;  %1277 = vmatpush3.bf16.msra.mxu1 (!%p1162_p6), %v1446_v36  ;;  %v1453_v43 = vld [vmem:[#allocation15 + $0x18] sm:$0xff] (!%p1162_p6)   ;;  %v1455_v45 = vld [vmem:[#allocation15 + $0x20] sm:$0xff] (!%p1162_p6)   ;;  %v1456_v46 = vld [vmem:[#allocation14 + $0x28] sm:$0xff] (!%p1162_p6)  }
 0x1aa   : > { %1296 = vmatprep.subr.bf16.mxu0 (!%p1162_p6), %v1710_v34  ;;  %1278 = vmatprep.subr.bf16.mxu1 (!%p1162_p6), %v1710_v34  ;;  %v1457_v47 = vld [vmem:[#allocation15 + $0x28] sm:$0xff] (!%p1162_p6)   ;;  %v1458_v48 = vld [vmem:[#allocation14 + $0x30] sm:$0xff] (!%p1162_p6)   ;;  %v1460_v50 = vld [vmem:[#allocation14 + $0x38] sm:$0xff] (!%p1162_p6)  }
 0x1ab   : > { %v1459_v49 = vld [vmem:[#allocation15 + $0x30] sm:$0xff] (!%p1162_p6)   ;;  %v1461_v51 = vld [vmem:[#allocation15 + $0x38] sm:$0xff] (!%p1162_p6)  }
 0x1ac   : > { %1273 = vmatmul.mubr.msk.bf16.vlgmr.msra.gmra.mrb[0].mxu0 (!%p1162_p6), %vm647_vm2, %v1163_v35  ;;  %v639_v52 = vld [vmem:[#allocation3] sm:$0xff] (!%p1162_p6)  ;;  %v1173_v1 = vld [vmem:[%s2022_s7] ss:$0 sm:$0xff] (!%p1162_p6) }
 0x1ad   : > { %1297 = vmatpush3.bf16.msra.mxu0 (!%p1162_p6), %v1447_v37  ;;  %1312 = vmatprep.mubr.msk.bf16.mxu0 (!%p1162_p6), %vm1711_vm1, %v1710_v34  ;;  %v640_v53 = vunpack.c.l.bf16 (!%p1162_p6), %v639_v52  ;;  %v641_v54 = vunpack.c.h.bf16 (!%p1162_p6), %v639_v52 }
 0x1ae   : > { %1298 = vmatprep.subr.bf16.mxu0 %v1710_v34  ;;  %1279 = vmatpush3.bf16.msra.mxu1 %v1448_v38 }
 0x1af   : > { %1280 = vmatprep.subr.bf16.mxu1 %v1710_v34 }
 0x1b1   : > { %1299 = vmatpush3.bf16.msra.mxu0 %v1449_v39 }
 0x1b2   : > { %1300 = vmatprep.subr.bf16.mxu0 %v1710_v34  ;;  %1281 = vmatpush3.bf16.msra.mxu1 %v1450_v40 }
 0x1b3   : > { %1282 = vmatprep.subr.bf16.mxu1 %v1710_v34 }
 0x1b5   : > { %1301 = vmatpush3.bf16.msra.mxu0 %v1451_v41 }
 0x1b6   : > { %1302 = vmatprep.subr.bf16.mxu0 %v1710_v34  ;;  %1283 = vmatpush3.bf16.msra.mxu1 %v1452_v42 }
 0x1b7   : > { %1284 = vmatprep.subr.bf16.mxu1 %v1710_v34 }
 0x1b9   : > { %1303 = vmatpush3.bf16.msra.mxu0 %v1453_v43 }
 0x1ba   : > { %1304 = vmatprep.subr.bf16.mxu0 %v1710_v34  ;;  %1285 = vmatpush3.bf16.msra.mxu1 %v1454_v44 }
 0x1bb   : > { %1286 = vmatprep.subr.bf16.mxu1 %v1710_v34 }
 0x1bd   : > { %1305 = vmatpush3.bf16.msra.mxu0 %v1455_v45 }
 0x1be   : > { %1306 = vmatprep.subr.bf16.mxu0 %v1710_v34  ;;  %1287 = vmatpush3.bf16.msra.mxu1 %v1456_v46 }
 0x1bf   : > { %1288 = vmatprep.subr.bf16.mxu1 %v1710_v34 }
 0x1c1   : > { %1307 = vmatpush3.bf16.msra.mxu0 %v1457_v47 }
 0x1c2   : > { %1308 = vmatprep.subr.bf16.mxu0 %v1710_v34  ;;  %1289 = vmatpush3.bf16.msra.mxu1 %v1458_v48 }
 0x1c3   : > { %1290 = vmatprep.subr.bf16.mxu1 %v1710_v34 }
 0x1c5   : > { %1309 = vmatpush3.bf16.msra.mxu0 %v1459_v49 }
 0x1c6   : > { %1310 = vmatprep.subr.bf16.mxu0 %v1710_v34  ;;  %1291 = vmatpush3.bf16.msra.mxu1 %v1460_v50 }
 0x1c9   : > { %1311 = vmatpush3.bf16.msra.mxu0 %v1461_v51 }
 0x27f   : > { %v685_v55 = vpop.f32.mrb[0].mxu0 }
 0x280   : > { %v686_v56 = vadd.f32 %v685_v55, %v640_v53  ;;  %v1274_v57 = vpop.f32.mrb[1].mxu0 }
 0x281   : > { %v688_v58 = vpop.f32.mrb[2].mxu0 }
 0x282   : > { %v689_v59 = vadd.f32 %v688_v58, %v641_v54  ;;  %v1275_v60 = vpop.f32.mrb[3].mxu0  ;;  %v692_v61 = vmax.f32 %v686_v56, 0.0 }
 0x284   : > { %v693_v62 = vmax.f32 %v689_v59, 0.0 }
 0x286   : > { %v694_v63 = vpack.c.bf16 %v693_v62, %v692_v61 }
 0x288   : > { %1293 = vmatmul.mubr.bf16.vlgmr.msra.gmra.mrb[0].mxu1 %v694_v63  ;;  %1313 = vmatmul.mubr.bf16.vlgmr.msra.gmra.mrb[4].mxu0 %v694_v63 }
 0x35b   : > { %v793_v0 = vpop.f32.mrb[0].mxu1  ;;  %v909_v2 = vpop.f32.mrb[4].mxu0 }
 0x35c   : > { %v1294_v3 = vpop.f32.mrb[1].mxu1  ;;  %v1314_v4 = vpop.f32.mrb[5].mxu0  ;;  %v910_v7 = vadd.f32 %v1173_v1, %v909_v2 }
 0x35d   : > { %v796_v5 = vpop.f32.mrb[2].mxu1  ;;  %v912_v6 = vpop.f32.mrb[6].mxu0 }
 0x35e   : > { %v800_v8 = vpack.c.bf16 %v796_v5, %v793_v0  ;;  %v913_v9 = vadd.f32 %v1173_v1, %v912_v6  ;;  %v1295_v10 = vpop.f32.mrb[3].mxu1  ;;  %v1315_v11 = vpop.f32.mrb[7].mxu0 }
 0x360   : > { %803 = vst [vmem:[#allocation4] sm:$0xff] %v800_v8  ;;  %v916_v12 = vpack.c.bf16 %v913_v9, %v910_v7 }
 0x362   : > { %919 = vst [vmem:[#allocation5] sm:$0xff] %v916_v12 }
 0x363 PF: > { %p1182_p8 = scmp.ne.s32.totalorder %s1690_s27, 1 }
 0x364   : > { %v1712_v14 = vmov (!%p1182_p8), 0.0   ;;  %vm1713_vm3 = vmmov (!%p1182_p8), 0   ;;  %v1183_v15 = vcombine.low (!%p1182_p8), %v1963_v31, %v1965_v32  ;;  %vm937_vm4 = vcmask (!%p1182_p8), 130048  }
 0x365   : > { %923 = sbr.rel (%p1182_p8) target bundleno = 1092 (0x444), region = 88  ;;  %1316 = vmatprep.subr.bf16.mxu0 (!%p1182_p8), %v1712_v14  ;;  %1318 = vmatprep.mubr.msk.bf16.mxu0 (!%p1182_p8), %vm1713_vm3, %v1712_v14 }
 0x367   : > { %v924_v13 = vld [vmem:[#allocation4] sm:$0xff] (!%p1182_p8) }
 0x368   : > { %1317 = vmatpush3.bf16.msra.mxu0 (!%p1182_p8), %v924_v13 }
 0x369   : > { %v929_v16 = vld [vmem:[#allocation5] sm:$0xff] (!%p1182_p8) }
 0x36a   : > { %v930_v17 = vunpack.c.l.bf16 (!%p1182_p8), %v929_v16  ;;  %v931_v18 = vunpack.c.h.bf16 (!%p1182_p8), %v929_v16 }
 0x36b   : > { %1319 = vmatmul.mubr.msk.bf16.vlgmr.msra.gmra.mrb[0].mxu0 (!%p1182_p8), %vm937_vm4, %v1183_v15 }
 0x43e   : > { %v975_v19 = vpop.f32.mrb[0].mxu0 }
 0x43f   : > { %v976_v20 = vadd.f32 %v975_v19, %v930_v17  ;;  %v1320_v21 = vpop.f32.mrb[1].mxu0 }
 0x440   : > { %v978_v22 = vpop.f32.mrb[2].mxu0 }
 0x441   : > { %982 = vst [vmem:[#allocation17] sm:$0xff] %v976_v20  ;;  %v979_v23 = vadd.f32 %v978_v22, %v931_v18  ;;  %v1321_v24 = vpop.f32.mrb[3].mxu0 }
 0x443   : > { %983 = vst [vmem:[#allocation17 + $0x8] sm:$0xff] %v979_v23 }
 0x444 PF: > { %s2036_s27 = sadd.s32 4294967295, %s1698_s29   ;;  %s1714_s12 = smov [#allocation17]  }
 0x445   : > { %p1981_p9 = scmp.eq.s32.totalorder %s2036_s27, 1  ;;  %s999_s20 = sshll.u32 %s1714_s12, 4  ;;  %s1000_s20 = int_to_ptr.vmem [resolvable:$true] %s999_s20 }
 0x446   : > { %s1630_s1 = scalar_lea.vmem %s1000_s20, 256  ;;  %s1636_s30 = scalar_lea.vmem %s1000_s20, 512 }
 0x447   : > { %p1631_p10 = scmp.ne.s32.totalorder %s1000_s20, %s1630_s1  ;;  %p1637_p13 = scmp.lt.s32.totalorder %s1000_s20, %s1000_s20 }
 0x448   : > { %p1638_p0 = scmp.lt.s32.totalorder %s1636_s30, %s1630_s1 }
 0x449   : > { %p1632_p11 = pnand %p1631_p10, %p1981_p9 }
 0x44a   : > { %p1639_p1 = por %p1638_p0, %p1637_p13 }
 0x44b   : > { %p1633_p12 = pneg %p1632_p11 }
 0x44d   : > { %p1640_p4 = pnand %p1639_p1, %p1633_p12 }
 0x44f   : > { %1643 = shalt.err (!%p1640_p4)
}
 0x450   : > { %s1644_s23 = scalar_lea.hbm %s2023_s8, 256 }
 0x451   : > { %p1645_p2 = scmp.ne.s32.totalorder %s2023_s8, %s1644_s23  ;;  %p1650_p5 = scmp.lt.u32.totalorder %s1644_s23, %s2023_s8 }
 0x453   : > { %p1646_p3 = pnand %p1645_p2, %p1981_p9 }
 0x455   : > { %p1647_p7 = pneg %p1646_p3 }
 0x457   : > { %p1652_p6 = pnand %p1650_p5, %p1647_p7 }
 0x459   : > { %1655 = shalt.err (!%p1652_p6)
}
 0x45a   : > { %s1715_s13 = smov 128   ;;  %s1716_s19 = smov 8  }
 0x45b   : > { %1347 = dma.vmem_to_hbm [thread:$0]  (%p1981_p9), %s1000_s20, 256, %s2023_s8, [#allocation8], %s1715_s13, %s1715_s13, %s1716_s19  }
 0x45c PF: > { %p1386_p8 = scmp.ge.s32.totalorder %s1698_s29, 2  ;;  %s2038_s11 = sadd.s32 4294967294, %s1698_s29  }
 0x45d   : > { %p1387_p10 = scmp.eq.s32.totalorder %s2038_s11, 1 }
 0x45f   : > { %p1370_p11 = pnand %p1387_p10, %p1386_p8 }
 0x461   : > { %1685 = dma.done.wait (!%p1370_p11), [#allocation8], 256  }
 0x462   : > { %1687 = vsyncadd (!%p1370_p11), [#allocation8], 4294967040  ;;  %s25_s29 = sadd.s32 1, %s1698_s29   ;;  %s2039_s27 = smov %s1694_s28 }
 0x463   : > { %p22_p12 = scmp.ge.s32.totalorder %s25_s29, 4   ;;  %s2040_s28 = smov %s2042_s18 }
 0x465   :  { %24 = sbr.rel (!%p22_p12) target bundleno = 9 (0x9), region = 126 }
 0x46c   :  { %1020 = vsyncpa [#allocation7], 1 }
 0x46d   :  { %1022 = vsyncpa [#allocation7 + $0x1], 1 }
 0x46e   :  { %1023 = vsyncpa [#allocation10], 1 }
 0x46f   :  { %1024 = vsyncpa [#allocation13], 1 }
 0x470   :  { %1025 = vsyncpa [#allocation16], 1 }
 0x471   :  { %1026 = vsyncpa [#allocation8], 1 }
 0x472   :  { %1028 = vsyncpa [#allocation8 + $0x1], 1 }

</bundles_post_ra>
